<compile_context>
chip_gen: v7x
topology: tpu7x:2x2x1
jax: 0.10.0
libtpu: 0.0.40
codegen_flags: <defaults>
</compile_context>

<pallas_src>
import functools

import jax
import jax.numpy as jnp
from jax.experimental import pallas as pl
from jax.experimental.pallas import tpu as pltpu

_EPS = 1e-5
_LANES = 128
_BLOCK_ROWS = 1024   # tunable: 512..4096; diminishing returns past ~1-2K rows
_NUM_CORES = 2       # leading "parallel" axis (2 TCs on v7x; no-op elsewhere)


def _round_up(x, m):
    return ((x + m - 1) // m) * m


def _log_depth_l1_kernel(n_ref, pred_ref, gt_ref, sum_ref, cnt_ref,
                         acc_sum, acc_cnt, *, block_rows, eps):
    c = pl.program_id(0)            # core / row-range partition ("parallel")
    i = pl.program_id(1)            # step within partition ("arbitrary")
    steps = pl.num_programs(1)

    @pl.when(i == 0)
    def _():
        acc_sum[...] = jnp.zeros_like(acc_sum)
        acc_cnt[...] = jnp.zeros_like(acc_cnt)

    gt = gt_ref[...].astype(jnp.float32)
    pred = pred_ref[...].astype(jnp.float32)

    # Flat element offset of this block as *intended* by the grid (the index
    # map may clamp duplicate trailing blocks; those are fully masked here).
    block_start = (c * steps + i) * (block_rows * _LANES)
    local_flat = (
        jax.lax.broadcasted_iota(jnp.int32, (block_rows, _LANES), 0) * _LANES
        + jax.lax.broadcasted_iota(jnp.int32, (block_rows, _LANES), 1)
    )
    in_bounds = local_flat < (n_ref[0] - block_start)

    mask = (gt > eps) & in_bounds
    safe_gt = jnp.where(mask, gt, jnp.ones_like(gt))
    diff = jnp.where(mask, jnp.abs(jnp.log(safe_gt) - pred), jnp.zeros_like(gt))

    # Elementwise (VALU-only) accumulation; no per-step cross-lane reductions.
    acc_sum[...] += diff
    acc_cnt[...] += mask.astype(jnp.float32)

    @pl.when(i == steps - 1)
    def _():
        sum_ref[...] = jnp.reshape(jnp.sum(acc_sum[...]), (1, 1, 1))
        cnt_ref[...] = jnp.reshape(jnp.sum(acc_cnt[...]), (1, 1, 1))


def log_depth_l1_loss(pred, gt, *, eps=_EPS, block_rows=_BLOCK_ROWS):
    """Pallas TPU implementation of LogDepthL1Loss.forward."""
    pred_flat = jnp.reshape(pred, (-1,))
    gt_flat = jnp.reshape(gt, (-1,))
    n = pred_flat.shape[0]

    rows = n // _LANES
    n_main = rows * _LANES
    rem = n - n_main

    # Tail (< 128 elements) handled in plain JAX so the big arrays never get
    # padded / copied in HBM in the common 128-aligned case.
    if rem:
        tail_pred = pred_flat[n_main:].astype(jnp.float32)
        tail_gt = gt_flat[n_main:].astype(jnp.float32)
        tail_mask = tail_gt > eps
        tail_safe = jnp.where(tail_mask, tail_gt, 1.0)
        tail_sum = jnp.sum(
            jnp.where(tail_mask, jnp.abs(jnp.log(tail_safe) - tail_pred), 0.0))
        tail_cnt = jnp.sum(tail_mask.astype(jnp.float32))
    else:
        tail_sum = jnp.float32(0.0)
        tail_cnt = jnp.float32(0.0)

    if rows == 0:
        return tail_sum / tail_cnt

    # Zero-copy 2-D view when n is a multiple of 128 (typical depth maps).
    if rem:
        pred2d = pred_flat[:n_main].reshape(rows, _LANES)
        gt2d = gt_flat[:n_main].reshape(rows, _LANES)
    else:
        pred2d = pred_flat.reshape(rows, _LANES)
        gt2d = gt_flat.reshape(rows, _LANES)

    # Shrink the block for small inputs; keep it a multiple of 8 sublanes.
    block_rows_eff = min(_round_up(block_rows, 8), _round_up(rows, 8))
    num_blocks = pl.cdiv(rows, block_rows_eff)
    steps_per_core = pl.cdiv(num_blocks, _NUM_CORES)

    # Clamp duplicate trailing block indices into range; their contribution is
    # zeroed in-kernel by the flat-index-vs-n mask, so nothing is double-counted.
    def in_map(c, i, n_ref):
        return (jnp.minimum(c * steps_per_core + i, num_blocks - 1), 0)

    def out_map(c, i, n_ref):
        return (c, 0, 0)

    kernel = functools.partial(
        _log_depth_l1_kernel, block_rows=block_rows_eff, eps=eps)

    n_arr = jnp.array([n_main], dtype=jnp.int32)

    part_sum, part_cnt = pl.pallas_call(
        kernel,
        out_shape=(
            jax.ShapeDtypeStruct((_NUM_CORES, 1, 1), jnp.float32),
            jax.ShapeDtypeStruct((_NUM_CORES, 1, 1), jnp.float32),
        ),
        grid_spec=pltpu.PrefetchScalarGridSpec(
            num_scalar_prefetch=1,
            grid=(_NUM_CORES, steps_per_core),
            in_specs=[
                pl.BlockSpec((block_rows_eff, _LANES), in_map),
                pl.BlockSpec((block_rows_eff, _LANES), in_map),
            ],
            out_specs=[
                pl.BlockSpec((1, 1, 1), out_map),
                pl.BlockSpec((1, 1, 1), out_map),
            ],
            scratch_shapes=[
                pltpu.VMEM((block_rows_eff, _LANES), jnp.float32),
                pltpu.VMEM((block_rows_eff, _LANES), jnp.float32),
            ],
        ),
        compiler_params=pltpu.CompilerParams(
            dimension_semantics=("parallel", "arbitrary"),
        ),
    )(n_arr, pred2d, gt2d)

    total_sum = jnp.sum(part_sum) + tail_sum
    total_cnt = jnp.sum(part_cnt) + tail_cnt
    # 0/0 -> NaN for an empty mask, matching torch's mean of an empty tensor.
    return total_sum / total_cnt


def _reference(pred, gt, eps=_EPS):
    pred = jnp.reshape(pred, (-1,)).astype(jnp.float32)
    gt = jnp.reshape(gt, (-1,)).astype(jnp.float32)
    mask = gt > eps
    safe_gt = jnp.where(mask, gt, 1.0)
    diff = jnp.where(mask, jnp.abs(jnp.log(safe_gt) - pred), 0.0)
    return jnp.sum(diff) / jnp.sum(mask.astype(jnp.float32))


if __name__ == "__main__":
    key = jax.random.PRNGKey(0)
    k_pred, k_gt, k_mask = jax.random.split(key, 3)

    B, C, H, W = 2, 1, 16, 16  # depth maps, NCHW
    pred = jax.random.normal(k_pred, (B, C, H, W), dtype=jnp.float32)
    gt_pos = jax.random.uniform(
        k_gt, (B, C, H, W), dtype=jnp.float32, minval=0.1, maxval=5.0)
    valid = jax.random.uniform(k_mask, (B, C, H, W)) > 0.3
    gt = jnp.where(valid, gt_pos, 0.0)

    loss = jax.block_until_ready(log_depth_l1_loss(pred, gt))
    ref = jax.block_until_ready(_reference(pred, gt))
    assert jnp.allclose(loss, ref, rtol=1e-4, atol=1e-6), (loss, ref)

    # Non-128-aligned shape exercises the in-kernel tail mask + JAX tail path.
    H2, W2 = 15, 9
    pred2 = jax.random.normal(k_pred, (B, C, H2, W2), dtype=jnp.float32)
    gt2p = jax.random.uniform(
        k_gt, (B, C, H2, W2), dtype=jnp.float32, minval=0.1, maxval=5.0)
    gt2 = jnp.where(jax.random.uniform(k_mask, (B, C, H2, W2)) > 0.3, gt2p, 0.0)
    loss2 = jax.block_until_ready(log_depth_l1_loss(pred2, gt2))
    ref2 = jax.block_until_ready(_reference(pred2, gt2))
    assert jnp.allclose(loss2, ref2, rtol=1e-4, atol=1e-6), (loss2, ref2)

    print("KERNEL_OK")
</pallas_src>

<mosaic_0001>
module attributes {stable_mosaic.version = 11 : i64} {
  func.func @_log_depth_l1_kernel(%arg0: i32, %arg1: i32, %arg2: memref<1xi32, #tpu.memory_space<smem>>, %arg3: memref<8x128xf32, #tpu.memory_space<vmem>>, %arg4: memref<8x128xf32, #tpu.memory_space<vmem>>, %arg5: memref<1x1x1xf32, #tpu.memory_space<vmem>>, %arg6: memref<1x1x1xf32, #tpu.memory_space<vmem>>, %arg7: memref<8x128xf32, #tpu.memory_space<vmem>>, %arg8: memref<8x128xf32, #tpu.memory_space<vmem>>) attributes {dimension_semantics = [#tpu.dimension_semantics<parallel>, #tpu.dimension_semantics<arbitrary>], iteration_bounds = array<i64: 2, 1>, scalar_prefetch = 1 : i64, scratch_operands = 2 : i64, tpu.core_type = #tpu.core_type<tc>, window_params = [{transform_indices = @transform_0, window_bounds = array<i64: 8, 128>}, {transform_indices = @transform_1, window_bounds = array<i64: 8, 128>}, {transform_indices = @transform_2, window_bounds = array<i64: 1, 1, 1>}, {transform_indices = @transform_3, window_bounds = array<i64: 1, 1, 1>}]} {
    %c0_i32 = arith.constant 0 : i32
    %0 = arith.cmpi eq, %arg1, %c0_i32 : i32
    %1 = arith.extui %0 : i1 to i32
    %c0_i32_0 = arith.constant 0 : i32
    %2 = arith.cmpi ne, %1, %c0_i32_0 : i32
    scf.if %2 {
      %cst_17 = arith.constant 0.000000e+00 : f32
      %38 = vector.broadcast %cst_17 : f32 to vector<8x128xf32>
      %c0_18 = arith.constant 0 : index
      %c0_19 = arith.constant 0 : index
      %39 = vector.load %arg7[%c0_18, %c0_19] : memref<8x128xf32, #tpu.memory_space<vmem>>, vector<8x128xf32>
      tpu.vector_store %arg7[%c0_18, %c0_19], %38 {strides = array<i32>} : memref<8x128xf32, #tpu.memory_space<vmem>>, vector<8x128xf32>,
      %cst_20 = arith.constant 0.000000e+00 : f32
      %40 = vector.broadcast %cst_20 : f32 to vector<8x128xf32>
      %c0_21 = arith.constant 0 : index
      %c0_22 = arith.constant 0 : index
      %41 = vector.load %arg8[%c0_21, %c0_22] : memref<8x128xf32, #tpu.memory_space<vmem>>, vector<8x128xf32>
      tpu.vector_store %arg8[%c0_21, %c0_22], %40 {strides = array<i32>} : memref<8x128xf32, #tpu.memory_space<vmem>>, vector<8x128xf32>,
    } else {
    }
    %c0 = arith.constant 0 : index
    %c0_1 = arith.constant 0 : index
    %3 = vector.load %arg4[%c0, %c0_1] : memref<8x128xf32, #tpu.memory_space<vmem>>, vector<8x128xf32>
    %c0_2 = arith.constant 0 : index
    %c0_3 = arith.constant 0 : index
    %4 = vector.load %arg3[%c0_2, %c0_3] : memref<8x128xf32, #tpu.memory_space<vmem>>, vector<8x128xf32>
    %c1_i32 = arith.constant 1 : i32
    %5 = arith.muli %arg0, %c1_i32 : i32
    %6 = arith.addi %5, %arg1 : i32
    %c1024_i32 = arith.constant 1024 : i32
    %7 = arith.muli %6, %c1024_i32 : i32
    %8 = tpu.iota {dimensions = array<i32: 0>} : vector<8x128xi32>
    %c128_i32 = arith.constant 128 : i32
    %9 = vector.broadcast %c128_i32 : i32 to vector<8x128xi32>
    %10 = arith.muli %8, %9 : vector<8x128xi32>
    %11 = tpu.iota {dimensions = array<i32: 1>} : vector<8x128xi32>
    %12 = arith.addi %10, %11 : vector<8x128xi32>
    %c0_4 = arith.constant 0 : index
    %13 = memref.load %arg2[%c0_4] : memref<1xi32, #tpu.memory_space<smem>>
    %14 = arith.subi %13, %7 : i32
    %15 = vector.broadcast %14 : i32 to vector<8x128xi32>
    %16 = arith.cmpi slt, %12, %15 : vector<8x128xi32>
    %cst = arith.constant 9.99999974E-6 : f32
    %17 = vector.broadcast %cst : f32 to vector<8x128xf32>
    %18 = arith.cmpf ogt, %3, %17 : vector<8x128xf32>
    %19 = arith.andi %18, %16 : vector<8x128xi1>
    %cst_5 = arith.constant 1.000000e+00 : f32
    %20 = vector.broadcast %cst_5 : f32 to vector<8x128xf32>
    %21 = arith.select %19, %3, %20 : vector<8x128xi1>, vector<8x128xf32>
    %22 = math.log %21 : vector<8x128xf32>
    %23 = arith.subf %22, %4 : vector<8x128xf32>
    %24 = math.absf %23 : vector<8x128xf32>
    %cst_6 = arith.constant 0.000000e+00 : f32
    %25 = vector.broadcast %cst_6 : f32 to vector<8x128xf32>
    %26 = arith.select %19, %24, %25 : vector<8x128xi1>, vector<8x128xf32>
    %c0_7 = arith.constant 0 : index
    %c0_8 = arith.constant 0 : index
    %27 = vector.load %arg7[%c0_7, %c0_8] : memref<8x128xf32, #tpu.memory_space<vmem>>, vector<8x128xf32>
    %28 = arith.addf %27, %26 : vector<8x128xf32>
    %c0_9 = arith.constant 0 : index
    %c0_10 = arith.constant 0 : index
    %29 = vector.load %arg7[%c0_9, %c0_10] : memref<8x128xf32, #tpu.memory_space<vmem>>, vector<8x128xf32>
    tpu.vector_store %arg7[%c0_9, %c0_10], %28 {strides = array<i32>} : memref<8x128xf32, #tpu.memory_space<vmem>>, vector<8x128xf32>,
    %c0_11 = arith.constant 0 : index
    %c0_12 = arith.constant 0 : index
    %30 = vector.load %arg8[%c0_11, %c0_12] : memref<8x128xf32, #tpu.memory_space<vmem>>, vector<8x128xf32>
    %31 = arith.extui %19 : vector<8x128xi1> to vector<8x128xi32>
    %32 = arith.sitofp %31 : vector<8x128xi32> to vector<8x128xf32>
    %33 = arith.addf %30, %32 : vector<8x128xf32>
    %c0_13 = arith.constant 0 : index
    %c0_14 = arith.constant 0 : index
    %34 = vector.load %arg8[%c0_13, %c0_14] : memref<8x128xf32, #tpu.memory_space<vmem>>, vector<8x128xf32>
    tpu.vector_store %arg8[%c0_13, %c0_14], %33 {strides = array<i32>} : memref<8x128xf32, #tpu.memory_space<vmem>>, vector<8x128xf32>,
    %c0_i32_15 = arith.constant 0 : i32
    %35 = arith.cmpi eq, %arg1, %c0_i32_15 : i32
    %36 = arith.extui %35 : i1 to i32
    %c0_i32_16 = arith.constant 0 : i32
    %37 = arith.cmpi ne, %36, %c0_i32_16 : i32
    scf.if %37 {
      %c0_17 = arith.constant 0 : index
      %c0_18 = arith.constant 0 : index
      %38 = vector.load %arg7[%c0_17, %c0_18] : memref<8x128xf32, #tpu.memory_space<vmem>>, vector<8x128xf32>
      %39 = vector.shape_cast %38 : vector<8x128xf32> to vector<1x8x128xf32>
      %cst_19 = arith.constant dense<0.000000e+00> : vector<1xf32>
      %40 = vector.multi_reduction <add>, %39, %cst_19 [1, 2] : vector<1x8x128xf32> to vector<1xf32>
      %41 = vector.shape_cast %40 : vector<1xf32> to vector<1x1x1xf32>
      %42 = vector.extract %41[0, 0, 0] : f32 from vector<1x1x1xf32>
      %43 = vector.broadcast %42 : f32 to vector<1x1x1xf32>
      %c0_20 = arith.constant 0 : index
      %c0_21 = arith.constant 0 : index
      %c0_22 = arith.constant 0 : index
      %44 = vector.load %arg5[%c0_20, %c0_21, %c0_22] : memref<1x1x1xf32, #tpu.memory_space<vmem>>, vector<1x1x1xf32>
      tpu.vector_store %arg5[%c0_20, %c0_21, %c0_22], %43 {strides = array<i32>} : memref<1x1x1xf32, #tpu.memory_space<vmem>>, vector<1x1x1xf32>,
      %c0_23 = arith.constant 0 : index
      %c0_24 = arith.constant 0 : index
      %45 = vector.load %arg8[%c0_23, %c0_24] : memref<8x128xf32, #tpu.memory_space<vmem>>, vector<8x128xf32>
      %46 = vector.shape_cast %45 : vector<8x128xf32> to vector<1x8x128xf32>
      %cst_25 = arith.constant dense<0.000000e+00> : vector<1xf32>
      %47 = vector.multi_reduction <add>, %46, %cst_25 [1, 2] : vector<1x8x128xf32> to vector<1xf32>
      %48 = vector.shape_cast %47 : vector<1xf32> to vector<1x1x1xf32>
      %49 = vector.extract %48[0, 0, 0] : f32 from vector<1x1x1xf32>
      %50 = vector.broadcast %49 : f32 to vector<1x1x1xf32>
      %c0_26 = arith.constant 0 : index
      %c0_27 = arith.constant 0 : index
      %c0_28 = arith.constant 0 : index
      %51 = vector.load %arg6[%c0_26, %c0_27, %c0_28] : memref<1x1x1xf32, #tpu.memory_space<vmem>>, vector<1x1x1xf32>
      tpu.vector_store %arg6[%c0_26, %c0_27, %c0_28], %50 {strides = array<i32>} : memref<1x1x1xf32, #tpu.memory_space<vmem>>, vector<1x1x1xf32>,
    } else {
    }
    return
  }
  func.func @transform_0(%arg0: i32, %arg1: i32, %arg2: memref<1xi32, #tpu.memory_space<smem>>) -> (i32, i32) {
    %c1_i32 = arith.constant 1 : i32
    %0 = arith.muli %arg0, %c1_i32 : i32
    %1 = arith.addi %0, %arg1 : i32
    %c0_i32 = arith.constant 0 : i32
    %2 = arith.minsi %1, %c0_i32 : i32
    %c0_i32_0 = arith.constant 0 : i32
    %c0_i32_1 = arith.constant 0 : i32
    return %2, %c0_i32_0 : i32, i32
  }
  func.func @transform_1(%arg0: i32, %arg1: i32, %arg2: memref<1xi32, #tpu.memory_space<smem>>) -> (i32, i32) {
    %c1_i32 = arith.constant 1 : i32
    %0 = arith.muli %arg0, %c1_i32 : i32
    %1 = arith.addi %0, %arg1 : i32
    %c0_i32 = arith.constant 0 : i32
    %2 = arith.minsi %1, %c0_i32 : i32
    %c0_i32_0 = arith.constant 0 : i32
    %c0_i32_1 = arith.constant 0 : i32
    return %2, %c0_i32_0 : i32, i32
  }
  func.func @transform_2(%arg0: i32, %arg1: i32, %arg2: memref<1xi32, #tpu.memory_space<smem>>) -> (i32, i32, i32) {
    %c0_i32 = arith.constant 0 : i32
    %c0_i32_0 = arith.constant 0 : i32
    %c0_i32_1 = arith.constant 0 : i32
    return %arg0, %c0_i32, %c0_i32_0 : i32, i32, i32
  }
  func.func @transform_3(%arg0: i32, %arg1: i32, %arg2: memref<1xi32, #tpu.memory_space<smem>>) -> (i32, i32, i32) {
    %c0_i32 = arith.constant 0 : i32
    %c0_i32_0 = arith.constant 0 : i32
    %c0_i32_1 = arith.constant 0 : i32
    return %arg0, %c0_i32, %c0_i32_0 : i32, i32, i32
  }
}

</mosaic_0001>

<bundles_post_ra>
// kernel: tpu_custom_call.1
= control target key start
LH: loop header
LB: loop body
LE: loop exit
PB: predicated region body
PF: predicated region fallthrough
CT: control target
= control target key end

     0   :  { %s721_s0 = inlined_call_operand.<no memory space> [shape: s32[1], index: 0, kind: input, shape index: {}]   ;;  %s722_s1 = inlined_call_operand.hbm [shape: f32[4,128], index: 1, kind: input, shape index: {}]   ;;  %s723_s2 = inlined_call_operand.vmem [shape: f32[4,128], index: 2, kind: input, shape index: {}]   ;;  %s724_s3 = inlined_call_operand.vmem [shape: f32[2,1,1], index: 3, kind: output, shape index: {0}]   ;;  %s725_s4 = inlined_call_operand.vmem [shape: f32[2,1,1], index: 4, kind: output, shape index: {1}]  }
   0x1   :  { %10 = sst [smem:[#allocation5]] %s721_s0 }
   0x2   :  { %11 = vsyncpa [#allocation7], 0 }
   0x3   :  { %13 = vsyncpa [#allocation7 + $0x1], 0  ;;  %s639_s17 = smov 0   ;;  %s641_s18 = smov 0  }
   0x4   :  { %s643_s19 = smov 0   ;;  %s645_s20 = smov 0  }
   0x5   :  { %s647_s21 = smov 0  }
   0x6 LB: > { %s31_s0 = sadd.s32 1, %s601_s20  ;;  %s450_s22 = sadd.s32 4294967295, %s605_s21   ;;  %s605_s21 = sphi %s647_s21, %s19_s21   ;;  %s601_s20 = sphi %s645_s20, %s729_s20   ;;  %s597_s19 = sphi %s643_s19, %s728_s19   ;;  %s593_s18 = sphi %s641_s18, %s711_s18   ;;  %s589_s17 = sphi %s639_s17, %s727_s17  }
   0x7   : > { %p33_p0 = scmp.ge.s32.totalorder %s31_s0, 2  ;;  %p586_p1 = scmp.ne.s32.totalorder %s593_s18, 0 }
   0x8   : > { %p52_p2 = scmp.eq.s32.totalorder %s605_s21, 0  ;;  %p57_p3 = scmp.ne.s32.totalorder %s593_s18, %s589_s17 }
   0x9   : > { %s731_s0 = smov (%p33_p0, %s31_s0), 0  ;;  %p58_p4 = scmp.eq.s32.totalorder %s450_s22, 0 }
   0xa   : > { %p53_p5 = por %p586_p1, %p52_p2  ;;  %p453_p7 = scmp.ge.s32.totalorder %s605_s21, 2 }
   0xb   : > { %p669_p6 = por %p58_p4, %p57_p3 }
   0xc   : > { %161 = sbr.rel (%p453_p7) target bundleno = 46 (0x2e), region = 16 }
  0x13   : > { %164 = sbr.rel (!%p53_p5) target bundleno = 46 (0x2e), region = 20 }
  0x1a   : > { %178 = vsyncadd [#allocation7], 64  ;;  %s607_s24 = smov [#allocation6]   ;;  %s528_s28 = scalar_lea.hbm %s722_s1, 64 }
  0x1b   : > { %s183_s25 = sshll.u32 %s607_s24, 4  ;;  %p529_p8 = scmp.ne.s32.totalorder %s722_s1, %s528_s28  ;;  %s184_s25 = int_to_ptr.vmem [resolvable:$true] %s183_s25 }
  0x1c   : > { %p534_p9 = scmp.lt.u32.totalorder %s528_s28, %s528_s28  ;;  %p536_p10 = scmp.lt.u32.totalorder %s528_s28, %s722_s1 }
  0x1e   : > { %p537_p11 = por %p536_p10, %p534_p9 }
  0x20   : > { %p538_p12 = pnand %p537_p11, %p529_p8 }
  0x22   : > { %541 = shalt.err (!%p538_p12)
}
  0x23   : > { %s542_s7 = scalar_lea.vmem %s184_s25, 64  ;;  %s548_s8 = scalar_lea.vmem %s184_s25, 256 }
  0x24   : > { %p543_p13 = scmp.ne.s32.totalorder %s184_s25, %s542_s7  ;;  %p549_p0 = scmp.lt.s32.totalorder %s184_s25, %s184_s25 }
  0x25   : > { %p550_p1 = scmp.lt.s32.totalorder %s548_s8, %s542_s7 }
  0x27   : > { %p551_p2 = por %p550_p1, %p549_p0 }
  0x29   : > { %p552_p3 = pnand %p551_p2, %p543_p13 }
  0x2b   : > { %555 = shalt.err (!%p552_p3)
}
  0x2c   : > { %s608_s9 = smov 64   ;;  %s609_s10 = smov 4  }
  0x2d   : > { %189 = dma.hbm_to_vmem [thread:$0]  %s722_s1, 64, %s184_s25, [#allocation7], %s608_s9, %s608_s9, %s609_s10  }
  0x2e PF: > { %p461_p4 = scmp.ge.s32.totalorder %s605_s21, 1  ;;  %p210_p5 = scmp.lt.s32.totalorder %s605_s21, 3 }
  0x30   : > { %p211_p7 = pnand %p461_p4, %p210_p5 }
  0x31   : > { %s216_s13 = sand.u32 (!%p211_p7), 1, %s593_s18  }
  0x32   : > { %214 = sbr.rel (%p211_p7) target bundleno = 300 (0x12c), region = 28  ;;  %s462_s14 = sshll.u32 (!%p211_p7), %s216_s13, 3 }
  0x33   : > { %s217_s15 = scalar_lea.sflag (!%p211_p7), [#allocation7], %s216_s13  ;;  %s220_s16 = scalar_lea.vmem (!%p211_p7), [#allocation6], %s462_s14 }
  0x39   : > { %581 = dma.done.wait (%p669_p6), %s217_s15, 128  }
  0x3a   : > { %583 = vsyncadd (%p669_p6), %s217_s15, 4294967168  ;;  %p261_p8 = scmp.lt.s32.totalorder %s597_s19, 0  ;;  %v292_v0 = vlaneseq  ;;  %s298_s17 = sld [smem:[#allocation5]]  ;;  %v289_v9 = vld [vmem:[%s220_s16] sm:$0xff]  ;;  %v610_v14 = vmov 0.0   ;;  %vm332_vm3 = vcmask 0  }
  0x3b   : > { %s465_s25 = sshll.u32 %s597_s19, 10  ;;  %p276_p6 = scmp.lt.s32.totalorder %s597_s19, 1 }
  0x3c   : > { %s262_s22 = scalar_select %p261_p8, %s597_s19, 0  ;;  %v293_v1 = vshrl.u32 %v292_v0, 7  ;;  %v296_v2 = vand.u32 127, %v292_v0 }
  0x3d   : > { %s735_s19 = smov (!%p276_p6, %s597_s19), 1 }
  0x3e   : > { %s463_s24 = sshll.u32 %s262_s22, 1  ;;  %v294_v3 = vmul.u32 128, %v293_v1  ;;  %s278_s6 = scalar_lea.vmem %s724_s3, %s735_s19 }
  0x3f   : > { %p266_p9 = scmp.lt.s32.totalorder %s463_s24, 0  ;;  %s281_s10 = scalar_lea.vmem %s725_s4, %s735_s19 }
  0x40   : > { %v297_v4 = vadd.s32 %v296_v2, %v294_v3  ;;  %s299_s26 = ssub.s32 %s298_s17, %s465_s25 }
  0x41   : > { %s733_s24 = smov (!%p266_p9, %s463_s24), 0  ;;  %v300_v5 = vstv %s299_s26 }
  0x42   : > { %s464_s27 = sshll.u32 %s733_s24, 2  ;;  %vm301_vm0 = vcmp.lt.s32.totalorder %v297_v4, %v300_v5 }
  0x43   : > { %s269_s29 = scalar_lea.vmem %s723_s2, %s464_s27 }
  0x44   : > { %v288_v6 = vld [vmem:[%s269_s29] sm:$0xff] }
  0x45   : > { %vm302_vm1 = vcmp.gt.f32.partialorder %v288_v6, 1e-05 }
  0x46   : > { %vm303_vm2 = vmand %vm302_vm1, %vm301_vm0 }
  0x47   : > { %v304_v7 = vsel %vm303_vm2, %v288_v6, 1.0  ;;  %v466_v15 = vsel %vm303_vm2, 1.0, %v610_v14 }
  0x48   : > { %526 = vlog2.f32 %v304_v7 }
  0x52   : > { %v527_v8 = vpop.eup %526 }
  0x53   : > { %v306_v10 = vmul.f32 0.6931472, %v527_v8 }
  0x55   : > { %v307_v11 = vsub.f32 %v306_v10, %v289_v9 }
  0x57   : > { %v308_v12 = vand.u32 2147483647, %v307_v11 }
  0x59   : > { %v309_v13 = vsel %vm303_vm2, %v308_v12, 0.0 }
  0x5a   : > { %322 = vadd.xlane.f32.xlu0 %v309_v13 }
  0x5e   : > { %335 = vadd.xlane.f32.xlu0 %v466_v15 }
  0xe7   : > { %v323_v16 = vpop.xlane.xlu0 %322 }
  0xe8   : > { %v324_v17 = vrot.slane %v323_v16, 4 }
  0xea   : > { %v325_v18 = vadd.f32 %v324_v17, %v323_v16 }
  0xeb   : > { %v336_v19 = vpop.xlane.xlu0 %335 }
  0xec   : > { %v326_v20 = vrot.slane %v325_v18, 2  ;;  %v337_v21 = vrot.slane %v336_v19, 4 }
  0xee   : > { %v338_v22 = vadd.f32 %v337_v21, %v336_v19  ;;  %v327_v23 = vadd.f32 %v326_v20, %v325_v18 }
  0xf0   : > { %v339_v24 = vrot.slane %v338_v22, 2  ;;  %v328_v25 = vrot.slane %v327_v23, 1 }
  0xf2   : > { %v340_v26 = vadd.f32 %v339_v24, %v338_v22  ;;  %v329_v27 = vadd.f32 %v328_v25, %v327_v23 }
  0xf4   : > { %470 = vpush %v329_v27  ;;  %v341_v28 = vrot.slane %v340_v26, 1 }
  0xf6   : > { %v342_v29 = vadd.f32 %v341_v28, %v340_v26 }
  0xf8   : > { %472 = vpush %v342_v29 }
 0x125   : > { %s471_s7 = spop %470 }
 0x126   : > { %v331_v30 = vstv %s471_s7 }
 0x127   : > { %333 = vst.msk [vmem:[%s278_s6] sm:$0x1] %vm332_vm3, %v331_v30 }
 0x129   : > { %s473_s11 = spop %472 }
 0x12a   : > { %v344_v31 = vstv %s473_s11 }
 0x12b   : > { %345 = vst.msk [vmem:[%s281_s10] sm:$0x1] %vm332_vm3, %v344_v31 }
 0x12c PF: > { %s19_s21 = sadd.s32 1, %s605_s21   ;;  %s727_s17 = smov %s593_s18 }
 0x12d   : > { %p16_p10 = scmp.ge.s32.totalorder %s19_s21, 4   ;;  %s711_s18 = smov 0  }
 0x12e   : > { %s728_s19 = smov %s601_s20  ;;  %s729_s20 = smov %s731_s0 }
 0x12f   :  { %18 = sbr.rel (!%p16_p10) target bundleno = 6 (0x6), region = 91 }
 0x136   :  { %375 = vsyncpa [#allocation7], 1 }
 0x137   :  { %377 = vsyncpa [#allocation7 + $0x1], 1 }

</bundles_post_ra>
